<compile_context>
chip_gen: v7x
topology: tpu7x:2x2x1
jax: 0.10.0
libtpu: 0.0.40
codegen_flags: <defaults>
</compile_context>

<pallas_src>
import jax
import jax.numpy as jnp
from jax import lax
from jax.experimental import pallas as pl
from jax.experimental.pallas import tpu as pltpu

_INV_SQRT2 = 0.7071067811865476


def _round_up(a: int, b: int) -> int:
    return (a + b - 1) // b * b


def _gelu_erf_f32(h):
    # Exact (erf-based) GELU in f32 -- matches torch.nn.GELU() default.
    return 0.5 * h * (1.0 + lax.erf(h * jnp.float32(_INV_SQRT2)))


def _mlp_kernel_resident(x_ref, w1_ref, w2_ref, o_ref):
    # x_ref : (br, C)   activation row tile
    # w1_ref: (C, H)    fc1 weight, (K, N) layout, fully resident
    # w2_ref: (H, C)    fc2 weight, (K, N) layout, fully resident
    # o_ref : (br, C)   output row tile
    h = lax.dot_general(
        x_ref[...], w1_ref[...],
        dimension_numbers=(((1,), (0,)), ((), ())),
        preferred_element_type=jnp.float32)
    h = _gelu_erf_f32(h)
    # TODO(synk): Dropout(p=0.0) / eval-mode dropout is the identity, so it is omitted.
    o_ref[...] = lax.dot_general(
        h.astype(w2_ref.dtype), w2_ref[...],
        dimension_numbers=(((1,), (0,)), ((), ())),
        preferred_element_type=jnp.float32).astype(o_ref.dtype)


def _mlp_kernel_htiled(x_ref, w1_ref, w2_ref, o_ref, acc_ref):
    # Hidden dim streamed in chunks of th; f32 accumulator across chunks.
    # x_ref : (br, C), w1_ref: (C, th), w2_ref: (th, C), o/acc: (br, C)
    h_idx = pl.program_id(1)

    h = lax.dot_general(
        x_ref[...], w1_ref[...],
        dimension_numbers=(((1,), (0,)), ((), ())),
        preferred_element_type=jnp.float32)
    h = _gelu_erf_f32(h)
    partial = lax.dot_general(
        h.astype(w2_ref.dtype), w2_ref[...],
        dimension_numbers=(((1,), (0,)), ((), ())),
        preferred_element_type=jnp.float32)

    @pl.when(h_idx == 0)
    def _assign():
        acc_ref[...] = partial          # assign-on-first-step (no zero-fill)

    @pl.when(h_idx != 0)
    def _accumulate():
        acc_ref[...] += partial

    @pl.when(h_idx == pl.num_programs(1) - 1)
    def _finalize():
        o_ref[...] = acc_ref[...].astype(o_ref.dtype)


def _vmem_capacity_bytes() -> int:
    try:
        info = pltpu.get_tpu_info()
        cap = getattr(info, "vmem_capacity_bytes", None)
        if cap:
            return int(cap)
    except Exception:
        pass
    return 64 * 1024 * 1024  # conservative (v7x-level) fallback


def mlp_forward(x, w1, w2, *, block_rows=None, hidden_block=None, matmul_dtype=None):
    """MLP forward.

    x : (..., C) activations.
    w1: (4C, C)  fc1.weight  (PyTorch nn.Linear layout, no bias).
    w2: (C, 4C)  fc2.weight  (PyTorch nn.Linear layout, no bias).
    matmul_dtype: optional opt-in cast of matmul operands (precision change).
    """
    C = int(x.shape[-1])
    H = int(w1.shape[0])
    assert w1.shape == (H, C), f"fc1 weight must be (4*n_embd, n_embd), got {w1.shape}"
    assert w2.shape == (C, H), f"fc2 weight must be (n_embd, 4*n_embd), got {w2.shape}"

    lead = x.shape[:-1]
    N = 1
    for d in lead:
        N *= int(d)

    out_dtype = x.dtype
    if matmul_dtype is not None:            # flag-gated precision change (off by default)
        x = x.astype(matmul_dtype)
        w1 = w1.astype(matmul_dtype)
        w2 = w2.astype(matmul_dtype)

    # Canonical (K, N) MXU layout, transposed once outside the hot loop.
    # (In a real model do this at parameter-load time.)
    w1t = jnp.transpose(w1)  # (C, H)
    w2t = jnp.transpose(w2)  # (H, C)

    a_bytes = jnp.dtype(x.dtype).itemsize
    w_bytes = jnp.dtype(w1t.dtype).itemsize

    # Minimum sublane tile for the activation dtype (f32:8, bf16:16, int8/fp8:32).
    sub = {4: 8, 2: 16, 1: 32}.get(a_bytes, 8)
    n_sub = _round_up(max(N, 1), sub)

    # Generation-aware VMEM policy.
    vmem_cap = _vmem_capacity_bytes()
    budget = int(0.75 * vmem_cap)
    vmem_limit = max(int(min(vmem_cap - 8 * 1024 * 1024, 0.85 * vmem_cap)),
                     16 * 1024 * 1024)

    def vmem_need(br_, th_, wbufs):
        weights = wbufs * 2 * th_ * C * w_bytes      # w1 (C,th) + w2 (th,C) chunks
        acts = 2 * 2 * br_ * C * a_bytes             # x + out tiles, double-buffered
        inter = br_ * th_ * (4 + a_bytes)            # f32 GELU tile + cast copy (fc2 LHS)
        acc = 0 if th_ == H else br_ * C * 4         # f32 accumulator scratch
        return weights + acts + inter + acc

    # Row-tile candidates: large -> small, sublane-aligned, capped at the data size.
    br_cap = int(block_rows) if block_rows is not None else 1024
    br_candidates = []
    for b in (1024, 768, 512, 384, 256, 192, 128, 96, 64, 32, 16, 8):
        b = min(b, br_cap, n_sub)
        b = max(_round_up(b, sub), sub)
        if b not in br_candidates:
            br_candidates.append(b)
    br_candidates.sort(reverse=True)

    th = None
    br = None
    if hidden_block is not None:
        th = int(hidden_block)
        assert H % th == 0 and (th == H or th % 128 == 0), \
            "hidden_block must divide H and be a multiple of 128 (or equal H)"
        wbufs = 1 if th == H else 2
        for b in br_candidates:
            if vmem_need(b, th, wbufs) <= budget:
                br = b
                break
        if br is None:
            br = br_candidates[-1]
    else:
        # Prefer fully-resident weights (single hidden step, single-buffered weights).
        for b in br_candidates:
            if vmem_need(b, H, 1) <= budget:
                th, br = H, b
                break
        if th is None and H % 128 == 0 and H > 128:
            # Forced to stream the hidden dim: favor the largest row tile that
            # fits (minimizes weight re-streaming), then the largest chunk.
            chunk_divs = [d for d in range(128, H, 128) if H % d == 0]
            for b in br_candidates:
                for d in reversed(chunk_divs):
                    if vmem_need(b, d, 2) <= budget:
                        th, br = d, b
                        break
                if th is not None:
                    break
        if th is None:
            # Best-effort fallback (H not 128-tileable or nothing fits): resident
            # weights with the minimal row tile; may spill but stays correct.
            th, br = H, br_candidates[-1]

    # Megacore: make sure the parallel row axis has >= 2 tiles when possible
    # (v7x shards it across 2 TensorCores). Shrinking br only reduces VMEM.
    if n_sub >= 2 * sub:
        br = min(br, _round_up(n_sub // 2, sub))

    n_pad = _round_up(max(N, 1), br)
    x2 = x.reshape(N, C)
    if n_pad != N:
        x2 = jnp.pad(x2, ((0, n_pad - N), (0, 0)))

    row_tiles = n_pad // br
    weight_passes = 1 if th == H else row_tiles
    cost = pl.CostEstimate(
        flops=4 * n_pad * C * H,                               # two matmuls
        transcendentals=n_pad * H,                             # erf in GELU
        bytes_accessed=(2 * n_pad * C * a_bytes
                        + weight_passes * 2 * H * C * w_bytes),
    )

    compiler_params = pltpu.CompilerParams(
        dimension_semantics=(("parallel",) if th == H else ("parallel", "arbitrary")),
        vmem_limit_bytes=int(vmem_limit),
    )

    def call_resident(single_buffer_weights):
        wkw = dict(pipeline_mode=pl.Buffered(1)) if single_buffer_weights else {}
        return pl.pallas_call(
            _mlp_kernel_resident,
            out_shape=jax.ShapeDtypeStruct((n_pad, C), out_dtype),
            grid_spec=pltpu.PrefetchScalarGridSpec(
                num_scalar_prefetch=0,
                grid=(row_tiles,),
                in_specs=[
                    pl.BlockSpec((br, C), lambda i: (i, 0)),        # activation rows
                    pl.BlockSpec((C, H), lambda i: (0, 0), **wkw),  # fc1 weight (resident)
                    pl.BlockSpec((H, C), lambda i: (0, 0), **wkw),  # fc2 weight (resident)
                ],
                out_specs=pl.BlockSpec((br, C), lambda i: (i, 0)),
            ),
            compiler_params=compiler_params,
            cost_estimate=cost,
        )(x2, w1t, w2t)

    def call_htiled():
        return pl.pallas_call(
            _mlp_kernel_htiled,
            out_shape=jax.ShapeDtypeStruct((n_pad, C), out_dtype),
            grid_spec=pltpu.PrefetchScalarGridSpec(
                num_scalar_prefetch=0,
                grid=(row_tiles, H // th),
                in_specs=[
                    pl.BlockSpec((br, C), lambda i, h: (i, 0)),     # activation rows
                    pl.BlockSpec((C, th), lambda i, h: (0, h)),     # fc1 weight chunk
                    pl.BlockSpec((th, C), lambda i, h: (h, 0)),     # fc2 weight chunk
                ],
                out_specs=pl.BlockSpec((br, C), lambda i, h: (i, 0)),
                scratch_shapes=[pltpu.VMEM((br, C), jnp.float32)],
            ),
            compiler_params=compiler_params,
            cost_estimate=cost,
        )(x2, w1t, w2t)

    if th == H:
        try:
            out = call_resident(True)     # grid-invariant weights: single buffer
        except Exception:
            out = call_resident(False)    # fallback if Buffered(1) is unsupported
    else:
        out = call_htiled()

    if n_pad != N:
        out = out[:N]
    return out.reshape(*lead, C)


def _mlp_ref(x, w1, w2):
    """Pure-JAX reference of the same math (exact erf GELU, no bias)."""
    h = jnp.einsum("...c,hc->...h", x, w1)
    h = 0.5 * h * (1.0 + lax.erf(h * jnp.float32(_INV_SQRT2)))
    return jnp.einsum("...h,ch->...c", h, w2).astype(x.dtype)


if __name__ == "__main__":
    # Small shapes consistent with the module: batch=2, seq=8, n_embd=32.
    B, T, C = 2, 8, 32
    H = 4 * C

    key = jax.random.PRNGKey(0)
    kx, k1, k2 = jax.random.split(key, 3)

    x = jax.random.normal(kx, (B, T, C), dtype=jnp.float32)
    # Deterministic synthetic parameters (PyTorch Linear weight shapes, no bias).
    w1 = jax.random.normal(k1, (H, C), dtype=jnp.float32) * 0.02   # fc1.weight
    w2 = jax.random.normal(k2, (C, H), dtype=jnp.float32) * 0.02   # fc2.weight

    out = jax.block_until_ready(mlp_forward(x, w1, w2))
    assert out.shape == (B, T, C)
    assert jnp.allclose(out, _mlp_ref(x, w1, w2), atol=2e-5, rtol=2e-5)

    # Ragged-row path: N not a multiple of the sublane tile -> pad + slice.
    x_odd = jax.random.normal(kx, (2, 7, C), dtype=jnp.float32)
    out_odd = jax.block_until_ready(mlp_forward(x_odd, w1, w2))
    assert out_odd.shape == (2, 7, C)
    assert jnp.allclose(out_odd, _mlp_ref(x_odd, w1, w2), atol=2e-5, rtol=2e-5)

    # Hidden-dim-tiled accumulator path (two 128-wide chunks over H).
    C2 = 64
    H2 = 4 * C2
    xb = jax.random.normal(kx, (B, T, C2), dtype=jnp.float32)
    w1b = jax.random.normal(k1, (H2, C2), dtype=jnp.float32) * 0.02
    w2b = jax.random.normal(k2, (C2, H2), dtype=jnp.float32) * 0.02
    out_b = jax.block_until_ready(mlp_forward(xb, w1b, w2b, hidden_block=128))
    assert jnp.allclose(out_b, _mlp_ref(xb, w1b, w2b), atol=2e-5, rtol=2e-5)

    print("KERNEL_OK")
</pallas_src>

<mosaic_0001>
module attributes {stable_mosaic.version = 11 : i64} {
  func.func @_mlp_kernel_resident(%arg0: i32, %arg1: memref<8x32xf32, #tpu.memory_space<vmem>>, %arg2: memref<32x128xf32, #tpu.memory_space<vmem>>, %arg3: memref<128x32xf32, #tpu.memory_space<vmem>>, %arg4: memref<8x32xf32, #tpu.memory_space<vmem>>) attributes {dimension_semantics = [#tpu.dimension_semantics<parallel>], iteration_bounds = array<i64: 2>, scalar_prefetch = 0 : i64, scratch_operands = 0 : i64, tpu.core_type = #tpu.core_type<tc>, window_params = [{transform_indices = @transform_0, window_bounds = array<i64: 8, 32>}, {pipeline_mode = #tpu.pipeline_mode<synchronous>, transform_indices = @transform_1, window_bounds = array<i64: 32, 128>}, {pipeline_mode = #tpu.pipeline_mode<synchronous>, transform_indices = @transform_2, window_bounds = array<i64: 128, 32>}, {transform_indices = @transform_3, window_bounds = array<i64: 8, 32>}]} {
    %c0 = arith.constant 0 : index
    %c0_0 = arith.constant 0 : index
    %0 = vector.load %arg1[%c0, %c0_0] : memref<8x32xf32, #tpu.memory_space<vmem>>, vector<8x32xf32>
    %c0_1 = arith.constant 0 : index
    %c0_2 = arith.constant 0 : index
    %1 = vector.load %arg2[%c0_1, %c0_2] : memref<32x128xf32, #tpu.memory_space<vmem>>, vector<32x128xf32>
    %cst = arith.constant dense<0.000000e+00> : vector<8x128xf32>
    %2 = tpu.matmul %0, %1, %cst {dimension_numbers = #tpu.dot_dimension_numbers<[1], [0], [0], [1], [0, 0, 1, 1], [], []>} : vector<8x32xf32>, vector<32x128xf32>, vector<8x128xf32> -> vector<8x128xf32>
    %cst_3 = arith.constant 5.000000e-01 : f32
    %3 = vector.broadcast %cst_3 : f32 to vector<8x128xf32>
    %4 = arith.mulf %3, %2 : vector<8x128xf32>
    %cst_4 = arith.constant 0.707106769 : f32
    %5 = vector.broadcast %cst_4 : f32 to vector<8x128xf32>
    %6 = arith.mulf %2, %5 : vector<8x128xf32>
    %7 = math.erf %6 : vector<8x128xf32>
    %cst_5 = arith.constant 1.000000e+00 : f32
    %8 = vector.broadcast %cst_5 : f32 to vector<8x128xf32>
    %9 = arith.addf %8, %7 : vector<8x128xf32>
    %10 = arith.mulf %4, %9 : vector<8x128xf32>
    %c0_6 = arith.constant 0 : index
    %c0_7 = arith.constant 0 : index
    %11 = vector.load %arg3[%c0_6, %c0_7] : memref<128x32xf32, #tpu.memory_space<vmem>>, vector<128x32xf32>
    %cst_8 = arith.constant dense<0.000000e+00> : vector<8x32xf32>
    %12 = tpu.matmul %10, %11, %cst_8 {dimension_numbers = #tpu.dot_dimension_numbers<[1], [0], [0], [1], [0, 0, 1, 1], [], []>} : vector<8x128xf32>, vector<128x32xf32>, vector<8x32xf32> -> vector<8x32xf32>
    %c0_9 = arith.constant 0 : index
    %c0_10 = arith.constant 0 : index
    %13 = vector.load %arg4[%c0_9, %c0_10] : memref<8x32xf32, #tpu.memory_space<vmem>>, vector<8x32xf32>
    tpu.vector_store %arg4[%c0_9, %c0_10], %12 {strides = array<i32>} : memref<8x32xf32, #tpu.memory_space<vmem>>, vector<8x32xf32>,
    return
  }
  func.func @transform_0(%arg0: i32) -> (i32, i32) {
    %c0_i32 = arith.constant 0 : i32
    %c0_i32_0 = arith.constant 0 : i32
    return %arg0, %c0_i32 : i32, i32
  }
  func.func @transform_1(%arg0: i32) -> (i32, i32) {
    %c0_i32 = arith.constant 0 : i32
    %c0_i32_0 = arith.constant 0 : i32
    %c0_i32_1 = arith.constant 0 : i32
    return %c0_i32, %c0_i32_0 : i32, i32
  }
  func.func @transform_2(%arg0: i32) -> (i32, i32) {
    %c0_i32 = arith.constant 0 : i32
    %c0_i32_0 = arith.constant 0 : i32
    %c0_i32_1 = arith.constant 0 : i32
    return %c0_i32, %c0_i32_0 : i32, i32
  }
  func.func @transform_3(%arg0: i32) -> (i32, i32) {
    %c0_i32 = arith.constant 0 : i32
    %c0_i32_0 = arith.constant 0 : i32
    return %arg0, %c0_i32 : i32, i32
  }
}

module attributes {stable_mosaic.version = 11 : i64} {
  func.func @_mlp_kernel_resident(%arg0: i32, %arg1: memref<8x32xf32, #tpu.memory_space<vmem>>, %arg2: memref<32x128xf32, #tpu.memory_space<vmem>>, %arg3: memref<128x32xf32, #tpu.memory_space<vmem>>, %arg4: memref<8x32xf32, #tpu.memory_space<vmem>>) attributes {dimension_semantics = [#tpu.dimension_semantics<parallel>], iteration_bounds = array<i64: 2>, scalar_prefetch = 0 : i64, scratch_operands = 0 : i64, tpu.core_type = #tpu.core_type<tc>, window_params = [{transform_indices = @transform_0, window_bounds = array<i64: 8, 32>}, {pipeline_mode = #tpu.pipeline_mode<synchronous>, transform_indices = @transform_1, window_bounds = array<i64: 32, 128>}, {pipeline_mode = #tpu.pipeline_mode<synchronous>, transform_indices = @transform_2, window_bounds = array<i64: 128, 32>}, {transform_indices = @transform_3, window_bounds = array<i64: 8, 32>}]} {
    %c0 = arith.constant 0 : index
    %c0_0 = arith.constant 0 : index
    %0 = vector.load %arg1[%c0, %c0_0] : memref<8x32xf32, #tpu.memory_space<vmem>>, vector<8x32xf32>
    %c0_1 = arith.constant 0 : index
    %c0_2 = arith.constant 0 : index
    %1 = vector.load %arg2[%c0_1, %c0_2] : memref<32x128xf32, #tpu.memory_space<vmem>>, vector<32x128xf32>
    %cst = arith.constant dense<0.000000e+00> : vector<8x128xf32>
    %2 = tpu.matmul %0, %1, %cst {dimension_numbers = #tpu.dot_dimension_numbers<[1], [0], [0], [1], [0, 0, 1, 1], [], []>} : vector<8x32xf32>, vector<32x128xf32>, vector<8x128xf32> -> vector<8x128xf32>
    %cst_3 = arith.constant 5.000000e-01 : f32
    %3 = vector.broadcast %cst_3 : f32 to vector<8x128xf32>
    %4 = arith.mulf %3, %2 : vector<8x128xf32>
    %cst_4 = arith.constant 0.707106769 : f32
    %5 = vector.broadcast %cst_4 : f32 to vector<8x128xf32>
    %6 = arith.mulf %2, %5 : vector<8x128xf32>
    %7 = math.erf %6 : vector<8x128xf32>
    %cst_5 = arith.constant 1.000000e+00 : f32
    %8 = vector.broadcast %cst_5 : f32 to vector<8x128xf32>
    %9 = arith.addf %8, %7 : vector<8x128xf32>
    %10 = arith.mulf %4, %9 : vector<8x128xf32>
    %c0_6 = arith.constant 0 : index
    %c0_7 = arith.constant 0 : index
    %11 = vector.load %arg3[%c0_6, %c0_7] : memref<128x32xf32, #tpu.memory_space<vmem>>, vector<128x32xf32>
    %cst_8 = arith.constant dense<0.000000e+00> : vector<8x32xf32>
    %12 = tpu.matmul %10, %11, %cst_8 {dimension_numbers = #tpu.dot_dimension_numbers<[1], [0], [0], [1], [0, 0, 1, 1], [], []>} : vector<8x128xf32>, vector<128x32xf32>, vector<8x32xf32> -> vector<8x32xf32>
    %c0_9 = arith.constant 0 : index
    %c0_10 = arith.constant 0 : index
    %13 = vector.load %arg4[%c0_9, %c0_10] : memref<8x32xf32, #tpu.memory_space<vmem>>, vector<8x32xf32>
    tpu.vector_store %arg4[%c0_9, %c0_10], %12 {strides = array<i32>} : memref<8x32xf32, #tpu.memory_space<vmem>>, vector<8x32xf32>,
    return
  }
  func.func @transform_0(%arg0: i32) -> (i32, i32) {
    %c0_i32 = arith.constant 0 : i32
    %c0_i32_0 = arith.constant 0 : i32
    return %arg0, %c0_i32 : i32, i32
  }
  func.func @transform_1(%arg0: i32) -> (i32, i32) {
    %c0_i32 = arith.constant 0 : i32
    %c0_i32_0 = arith.constant 0 : i32
    %c0_i32_1 = arith.constant 0 : i32
    return %c0_i32, %c0_i32_0 : i32, i32
  }
  func.func @transform_2(%arg0: i32) -> (i32, i32) {
    %c0_i32 = arith.constant 0 : i32
    %c0_i32_0 = arith.constant 0 : i32
    %c0_i32_1 = arith.constant 0 : i32
    return %c0_i32, %c0_i32_0 : i32, i32
  }
  func.func @transform_3(%arg0: i32) -> (i32, i32) {
    %c0_i32 = arith.constant 0 : i32
    %c0_i32_0 = arith.constant 0 : i32
    return %arg0, %c0_i32 : i32, i32
  }
}

</mosaic_0001>

<bundles_post_ra>
// kernel: tpu_custom_call.1
= control target key start
LH: loop header
LB: loop body
LE: loop exit
PB: predicated region body
PF: predicated region fallthrough
CT: control target
= control target key end

     0   :  { %8 = vsyncpa [#allocation3], 0  ;;  %s813_s0 = inlined_call_operand.vmem [shape: f32[16,32], index: 0, kind: input, shape index: {}]   ;;  %s814_s1 = inlined_call_operand.vmem [shape: f32[32,128], index: 1, kind: input, shape index: {}]   ;;  %s815_s2 = inlined_call_operand.vmem [shape: f32[128,32], index: 2, kind: input, shape index: {}]   ;;  %s816_s3 = inlined_call_operand.hbm [shape: f32[16,32], index: 3, kind: output, shape index: {}]  }
   0x1   :  { %10 = vsyncpa [#allocation3 + $0x1], 0  ;;  %s651_s12 = smov 0   ;;  %s653_s13 = smov 0  }
   0x2   :  { %s655_s14 = smov 0   ;;  %s657_s15 = smov 0  }
   0x3 LB: > { %s672_s16 = sadd.s32 4294967295, %s625_s15   ;;  %s410_s17 = sadd.s32 4294967294, %s625_s15   ;;  %s625_s15 = sphi %s657_s15, %s822_s15   ;;  %s621_s14 = sphi %s655_s14, %s821_s14   ;;  %s617_s13 = sphi %s653_s13, %s820_s13   ;;  %s613_s12 = sphi %s651_s12, %s819_s12  }
   0x4   : > { %s676_s18 = sadd.s32 1, %s625_s15   ;;  %s91_s19 = sadd.s32 1, %s621_s14 }
   0x5   : > { %s88_s20 = ssub.s32 %s625_s15, %s676_s18  ;;  %p101_p0 = scmp.ne.s32.totalorder %s621_s14, %s617_s13 }
   0x6   : > { %p89_p1 = scmp.eq.s32.totalorder %s88_s20, 0  ;;  %p102_p2 = scmp.eq.s32.totalorder %s672_s16, 1 }
   0x7   : > { %p107_p3 = scmp.ne.s32.totalorder %s617_s13, %s613_s12  ;;  %p108_p4 = scmp.eq.s32.totalorder %s410_s17, 1 }
   0x8   : > { %s687_s21 = scalar_select %p89_p1, %s621_s14, %s91_s19  }
   0x9   : > { %p689_p5 = por %p102_p2, %p101_p0  ;;  %p693_p6 = por %p108_p4, %p107_p3 }
   0xa   : > { %p413_p7 = scmp.ge.s32.totalorder %s625_s15, 1  ;;  %p139_p8 = scmp.lt.s32.totalorder %s625_s15, 3 }
   0xc   : > { %p140_p9 = pnand %p413_p7, %p139_p8 }
   0xd   : > { %v167_v0 = vld [vmem:[%s814_s1] sm:$0xff] (!%p140_p9)  ;;  %v168_v1 = vld [vmem:[%s814_s1 + $0x8] sm:$0xff] (!%p140_p9)  ;;  %v169_v2 = vld [vmem:[%s814_s1 + $0x10] sm:$0xff] (!%p140_p9)  ;;  %v627_v3 = vmov (!%p140_p9), 0.0|0.0   ;;  %vm628_vm0 = vmmov (!%p140_p9), 0   ;;  %v629_v6 = vmov (!%p140_p9), 0.0  }
   0xe   : > { %143 = sbr.rel (%p140_p9) target bundleno = 481 (0x1e1), region = 32  ;;  %489 = vmatprep.subr.bf16.mxu0 (!%p140_p9), %v627_v3  ;;  %v490_v4 = vpack.c.bf16 (!%p140_p9), %v168_v1, %v167_v0  ;;  %v170_v5 = vld [vmem:[%s814_s1 + $0x18] sm:$0xff] (!%p140_p9)  ;;  %451 = vmatprep.mubr.msk.f32.mxu0 (!%p140_p9), %vm628_vm0, %v629_v6  ;;  %p162_p10 = scmp.lt.s32.totalorder (!%p140_p9), %s672_s16, 1  ;;  %v250_v7 = vld [vmem:[%s815_s2] sm:$0xff] (!%p140_p9)  ;;  %v251_v8 = vld [vmem:[%s815_s2 + $0x8] sm:$0xff] (!%p140_p9)  ;;  %vm171_vm1 = vcmask (!%p140_p9), 261120  }
   0xf   : > { %495 = vmatprep.subr.bf16.mxu1 (!%p140_p9), %v627_v3  ;;  %v496_v9 = vpack.c.bf16 (!%p140_p9), %v251_v8, %v250_v7  ;;  %v252_v10 = vld [vmem:[%s815_s2 + $0x10] sm:$0xff] (!%p140_p9)  ;;  %v253_v11 = vld [vmem:[%s815_s2 + $0x18] sm:$0xff] (!%p140_p9)  ;;  %486 = vmatprep.mubr.msk.f32.mxu1 (!%p140_p9), %vm628_vm0, %v629_v6  ;;  %v493_v12 = vpack.c.bf16 (!%p140_p9), %v170_v5, %v169_v2  ;;  %v254_v14 = vld [vmem:[%s815_s2 + $0x20] sm:$0xff] (!%p140_p9)  ;;  %s159_s6 = sand.u32 (!%p140_p9), 1, %s617_s13   ;;  %s418_s8 = sshll.u32 (!%p140_p9), %s672_s16, 7 }
  0x10   : > { %491 = vmatpush3.bf16.msra.mxu0 (!%p140_p9), %v490_v4  ;;  %v499_v13 = vpack.c.bf16 (!%p140_p9), %v253_v11, %v252_v10  ;;  %v255_v15 = vld [vmem:[%s815_s2 + $0x28] sm:$0xff] (!%p140_p9)  ;;  %v256_v18 = vld [vmem:[%s815_s2 + $0x30] sm:$0xff] (!%p140_p9)  ;;  %v257_v19 = vld [vmem:[%s815_s2 + $0x38] sm:$0xff] (!%p140_p9)  ;;  %s414_s7 = sshll.u32 (!%p140_p9), %s159_s6, 3 }
  0x11   : > { %492 = vmatprep.subr.bf16.mxu0 (!%p140_p9), %v627_v3  ;;  %497 = vmatpush3.bf16.msra.mxu1 (!%p140_p9), %v496_v9  ;;  %v502_v17 = vpack.c.bf16 (!%p140_p9), %v255_v15, %v254_v14  ;;  %v505_v20 = vpack.c.bf16 (!%p140_p9), %v257_v19, %v256_v18  ;;  %v258_v21 = vld [vmem:[%s815_s2 + $0x40] sm:$0xff] (!%p140_p9)  ;;  %v259_v22 = vld [vmem:[%s815_s2 + $0x48] sm:$0xff] (!%p140_p9)  ;;  %v260_v24 = vld [vmem:[%s815_s2 + $0x50] sm:$0xff] (!%p140_p9)  ;;  %s161_s9 = scalar_lea.vmem (!%p140_p9), [#allocation2], %s414_s7 }
  0x12   : > { %498 = vmatprep.subr.bf16.mxu1 (!%p140_p9), %v627_v3  ;;  %v508_v23 = vpack.c.bf16 (!%p140_p9), %v259_v22, %v258_v21  ;;  %v261_v25 = vld [vmem:[%s815_s2 + $0x58] sm:$0xff] (!%p140_p9)  ;;  %v262_v27 = vld [vmem:[%s815_s2 + $0x60] sm:$0xff] (!%p140_p9)  ;;  %v263_v28 = vld [vmem:[%s815_s2 + $0x68] sm:$0xff] (!%p140_p9)  ;;  %s351_s10 = sshll.u32 (!%p140_p9), %s161_s9, 4  ;;  %s772_s10 = int_to_ptr.vmem [resolvable:$true] %s351_s10 }
  0x13   : > { %v511_v26 = vpack.c.bf16 (!%p140_p9), %v261_v25, %v260_v24  ;;  %v514_v29 = vpack.c.bf16 (!%p140_p9), %v263_v28, %v262_v27  ;;  %v264_v30 = vld [vmem:[%s815_s2 + $0x70] sm:$0xff] (!%p140_p9)  ;;  %v265_v31 = vld [vmem:[%s815_s2 + $0x78] sm:$0xff] (!%p140_p9)  ;;  %s563_s24 = scalar_lea.vmem (!%p140_p9), %s772_s10, 128 }
  0x14   : > { %494 = vmatpush3.bf16.msra.mxu0 (!%p140_p9), %v493_v12  ;;  %v517_v32 = vpack.c.bf16 (!%p140_p9), %v265_v31, %v264_v30  ;;  %p564_p11 = scmp.ne.s32.totalorder (!%p140_p9), %s772_s10, %s563_s24 }
  0x15   : > { %s163_s19 = scalar_select %p162_p10, %s672_s16, 1  ;;  %500 = vmatpush3.bf16.msra.mxu1 %v499_v13 }
  0x16   : > { %501 = vmatprep.subr.bf16.mxu1 %v627_v3  ;;  %p565_p12 = pnand %p564_p11, %p689_p5  ;;  %s630_s16 = smov [#allocation2]  }
  0x17   : > { %s415_s20 = sshll.u32 %s163_s19, 3  ;;  %s770_s19 = scalar_lea.hbm %s816_s3, %s418_s8 }
  0x18   : > { %s165_s30 = scalar_lea.vmem %s813_s0, %s415_s20  ;;  %s338_s20 = scalar_lea.sflag [#allocation3], %s159_s6 }
  0x19   : > { %v166_v16 = vld [vmem:[%s165_s30] sm:$0xff]  ;;  %503 = vmatpush3.bf16.msra.mxu1 %v502_v17  ;;  %p566_p13 = pneg %p565_p12  ;;  %s567_s25 = sshll.u32 %s630_s16, 4  ;;  %s568_s25 = int_to_ptr.vmem [resolvable:$false] %s567_s25 }
  0x1a   : > { %452 = vmatmul.mubr.msk.f32.vlgmr.msra.gmra.mrb[0].mxu0 %vm171_vm1, %v166_v16  ;;  %504 = vmatprep.subr.bf16.mxu1 %v627_v3  ;;  %s569_s26 = scalar_lea.vmem %s568_s25, 256  ;;  %p570_p0 = scmp.lt.s32.totalorder %s772_s10, %s568_s25 }
  0x1b   : > { %p571_p1 = scmp.lt.s32.totalorder %s569_s26, %s563_s24 }
  0x1d   : > { %506 = vmatpush3.bf16.msra.mxu1 %v505_v20  ;;  %p572_p2 = por %p571_p1, %p570_p0 }
  0x1e   : > { %507 = vmatprep.subr.bf16.mxu1 %v627_v3 }
  0x1f   : > { %p573_p3 = pnand %p572_p2, %p566_p13 }
  0x21   : > { %509 = vmatpush3.bf16.msra.mxu1 %v508_v23 }
  0x22   : > { %510 = vmatprep.subr.bf16.mxu1 %v627_v3 }
  0x25   : > { %512 = vmatpush3.bf16.msra.mxu1 %v511_v26 }
  0x26   : > { %513 = vmatprep.subr.bf16.mxu1 %v627_v3 }
  0x29   : > { %515 = vmatpush3.bf16.msra.mxu1 %v514_v29 }
  0x2a   : > { %516 = vmatprep.subr.bf16.mxu1 %v627_v3 }
  0x2d   : > { %518 = vmatpush3.bf16.msra.mxu1 %v517_v32 }
  0xed   : > { %v241_v33 = vpop.f32.mrb[0].mxu0 }
  0xee   : > { %v246_v34 = vmul.f32 0.70710677, %v241_v33  ;;  %v453_v35 = vpop.f32.mrb[1].mxu0  ;;  %v245_v37 = vmul.f32 0.5, %v241_v33 }
  0xf0   : > { %561 = verf.f32 %v246_v34 }
  0xfa   : > { %v562_v36 = vpop.eup %561 }
  0xfb   : > { %v248_v38 = vadd.f32 1.0, %v562_v36 }
  0xfd   : > { %v249_v39 = vmul.f32 %v248_v38, %v245_v37 }
  0xff   : > { %487 = vmatmul.mubr.f32.vlgmr.msra.gmra.mrb[0].mxu1 %v249_v39 }
 0x1d2   : > { %v332_v40 = vpop.f32.mrb[0].mxu1 }
 0x1d3   : > { %336 = vst.msk [vmem:[%s161_s9] sm:$0xff] %vm171_vm1, %v332_v40  ;;  %v488_v41 = vpop.f32.mrb[1].mxu1 }
 0x1d4   : > { %576 = shalt.err (!%p573_p3)
}
 0x1d5   : > { %s577_s27 = scalar_lea.hbm %s770_s19, 128  ;;  %s581_s30 = scalar_lea.hbm %s816_s3, 256 }
 0x1d6   : > { %p578_p4 = scmp.ne.s32.totalorder %s770_s19, %s577_s27  ;;  %p582_p9 = scmp.lt.u32.totalorder %s770_s19, %s816_s3 }
 0x1d7   : > { %p583_p10 = scmp.lt.u32.totalorder %s581_s30, %s577_s27  ;;  %p585_p12 = scmp.lt.u32.totalorder %s577_s27, %s770_s19 }
 0x1d8   : > { %p579_p7 = pnand %p578_p4, %p689_p5 }
 0x1d9   : > { %p584_p11 = por %p583_p10, %p582_p9 }
 0x1da   : > { %p580_p8 = pneg %p579_p7 }
 0x1db   : > { %p586_p13 = por %p585_p12, %p584_p11 }
 0x1dd   : > { %p587_p0 = pnand %p586_p13, %p580_p8 }
 0x1df   : > { %590 = shalt.err (!%p587_p0)
}
 0x1e0   : > { %519 = dma.vmem_to_hbm [thread:$0]  (%p689_p5), %s772_s10, 128, %s770_s19, %s338_s20  }
 0x1e1 PF: > { %p525_p1 = scmp.ge.s32.totalorder %s625_s15, 2  ;;  %s363_s6 = sand.u32 1, %s613_s12  }
 0x1e2   : > { %s364_s7 = scalar_lea.sflag [#allocation3], %s363_s6 }
 0x1e3   : > { %p522_p2 = pnand %p525_p1, %p693_p6 }
 0x1e5   : > { %608 = dma.done.wait (!%p522_p2), %s364_s7, 128  }
 0x1e6   : > { %610 = vsyncadd (!%p522_p2), %s364_s7, 4294967168  ;;  %p13_p3 = scmp.ge.s32.totalorder %s676_s18, 4   ;;  %s819_s12 = smov %s617_s13 }
 0x1e7   : > { %s820_s13 = smov %s621_s14  ;;  %s821_s14 = smov %s687_s21 }
 0x1e8   : > { %s822_s15 = smov %s676_s18  ;;  %15 = sbr.rel (!%p13_p3) target bundleno = 3 (0x3), region = 67 }
 0x1ef   :  { %369 = vsyncpa [#allocation3], 1 }
 0x1f0   :  { %371 = vsyncpa [#allocation3 + $0x1], 1 }

// kernel: tpu_custom_call.1
= control target key start
LH: loop header
LB: loop body
LE: loop exit
PB: predicated region body
PF: predicated region fallthrough
CT: control target
= control target key end

     0   :  { %8 = vsyncpa [#allocation3], 0  ;;  %s813_s0 = inlined_call_operand.vmem [shape: f32[16,32], index: 0, kind: input, shape index: {}]   ;;  %s814_s1 = inlined_call_operand.vmem [shape: f32[32,128], index: 1, kind: input, shape index: {}]   ;;  %s815_s2 = inlined_call_operand.vmem [shape: f32[128,32], index: 2, kind: input, shape index: {}]   ;;  %s816_s3 = inlined_call_operand.hbm [shape: f32[16,32], index: 3, kind: output, shape index: {}]  }
   0x1   :  { %10 = vsyncpa [#allocation3 + $0x1], 0  ;;  %s651_s12 = smov 0   ;;  %s653_s13 = smov 0  }
   0x2   :  { %s655_s14 = smov 0   ;;  %s657_s15 = smov 0  }
   0x3 LB: > { %s672_s16 = sadd.s32 4294967295, %s625_s15   ;;  %s410_s17 = sadd.s32 4294967294, %s625_s15   ;;  %s625_s15 = sphi %s657_s15, %s822_s15   ;;  %s621_s14 = sphi %s655_s14, %s821_s14   ;;  %s617_s13 = sphi %s653_s13, %s820_s13   ;;  %s613_s12 = sphi %s651_s12, %s819_s12  }
   0x4   : > { %s676_s18 = sadd.s32 1, %s625_s15   ;;  %s91_s19 = sadd.s32 1, %s621_s14 }
   0x5   : > { %s88_s20 = ssub.s32 %s625_s15, %s676_s18  ;;  %p101_p0 = scmp.ne.s32.totalorder %s621_s14, %s617_s13 }
   0x6   : > { %p89_p1 = scmp.eq.s32.totalorder %s88_s20, 0  ;;  %p102_p2 = scmp.eq.s32.totalorder %s672_s16, 1 }
   0x7   : > { %p107_p3 = scmp.ne.s32.totalorder %s617_s13, %s613_s12  ;;  %p108_p4 = scmp.eq.s32.totalorder %s410_s17, 1 }
   0x8   : > { %s687_s21 = scalar_select %p89_p1, %s621_s14, %s91_s19  }
   0x9   : > { %p689_p5 = por %p102_p2, %p101_p0  ;;  %p693_p6 = por %p108_p4, %p107_p3 }
   0xa   : > { %p413_p7 = scmp.ge.s32.totalorder %s625_s15, 1  ;;  %p139_p8 = scmp.lt.s32.totalorder %s625_s15, 3 }
   0xc   : > { %p140_p9 = pnand %p413_p7, %p139_p8 }
   0xd   : > { %v167_v0 = vld [vmem:[%s814_s1] sm:$0xff] (!%p140_p9)  ;;  %v168_v1 = vld [vmem:[%s814_s1 + $0x8] sm:$0xff] (!%p140_p9)  ;;  %v169_v2 = vld [vmem:[%s814_s1 + $0x10] sm:$0xff] (!%p140_p9)  ;;  %v627_v3 = vmov (!%p140_p9), 0.0|0.0   ;;  %vm628_vm0 = vmmov (!%p140_p9), 0   ;;  %v629_v6 = vmov (!%p140_p9), 0.0  }
   0xe   : > { %143 = sbr.rel (%p140_p9) target bundleno = 481 (0x1e1), region = 32  ;;  %489 = vmatprep.subr.bf16.mxu0 (!%p140_p9), %v627_v3  ;;  %v490_v4 = vpack.c.bf16 (!%p140_p9), %v168_v1, %v167_v0  ;;  %v170_v5 = vld [vmem:[%s814_s1 + $0x18] sm:$0xff] (!%p140_p9)  ;;  %451 = vmatprep.mubr.msk.f32.mxu0 (!%p140_p9), %vm628_vm0, %v629_v6  ;;  %p162_p10 = scmp.lt.s32.totalorder (!%p140_p9), %s672_s16, 1  ;;  %v250_v7 = vld [vmem:[%s815_s2] sm:$0xff] (!%p140_p9)  ;;  %v251_v8 = vld [vmem:[%s815_s2 + $0x8] sm:$0xff] (!%p140_p9)  ;;  %vm171_vm1 = vcmask (!%p140_p9), 261120  }
   0xf   : > { %495 = vmatprep.subr.bf16.mxu1 (!%p140_p9), %v627_v3  ;;  %v496_v9 = vpack.c.bf16 (!%p140_p9), %v251_v8, %v250_v7  ;;  %v252_v10 = vld [vmem:[%s815_s2 + $0x10] sm:$0xff] (!%p140_p9)  ;;  %v253_v11 = vld [vmem:[%s815_s2 + $0x18] sm:$0xff] (!%p140_p9)  ;;  %486 = vmatprep.mubr.msk.f32.mxu1 (!%p140_p9), %vm628_vm0, %v629_v6  ;;  %v493_v12 = vpack.c.bf16 (!%p140_p9), %v170_v5, %v169_v2  ;;  %v254_v14 = vld [vmem:[%s815_s2 + $0x20] sm:$0xff] (!%p140_p9)  ;;  %s159_s6 = sand.u32 (!%p140_p9), 1, %s617_s13   ;;  %s418_s8 = sshll.u32 (!%p140_p9), %s672_s16, 7 }
  0x10   : > { %491 = vmatpush3.bf16.msra.mxu0 (!%p140_p9), %v490_v4  ;;  %v499_v13 = vpack.c.bf16 (!%p140_p9), %v253_v11, %v252_v10  ;;  %v255_v15 = vld [vmem:[%s815_s2 + $0x28] sm:$0xff] (!%p140_p9)  ;;  %v256_v18 = vld [vmem:[%s815_s2 + $0x30] sm:$0xff] (!%p140_p9)  ;;  %v257_v19 = vld [vmem:[%s815_s2 + $0x38] sm:$0xff] (!%p140_p9)  ;;  %s414_s7 = sshll.u32 (!%p140_p9), %s159_s6, 3 }
  0x11   : > { %492 = vmatprep.subr.bf16.mxu0 (!%p140_p9), %v627_v3  ;;  %497 = vmatpush3.bf16.msra.mxu1 (!%p140_p9), %v496_v9  ;;  %v502_v17 = vpack.c.bf16 (!%p140_p9), %v255_v15, %v254_v14  ;;  %v505_v20 = vpack.c.bf16 (!%p140_p9), %v257_v19, %v256_v18  ;;  %v258_v21 = vld [vmem:[%s815_s2 + $0x40] sm:$0xff] (!%p140_p9)  ;;  %v259_v22 = vld [vmem:[%s815_s2 + $0x48] sm:$0xff] (!%p140_p9)  ;;  %v260_v24 = vld [vmem:[%s815_s2 + $0x50] sm:$0xff] (!%p140_p9)  ;;  %s161_s9 = scalar_lea.vmem (!%p140_p9), [#allocation2], %s414_s7 }
  0x12   : > { %498 = vmatprep.subr.bf16.mxu1 (!%p140_p9), %v627_v3  ;;  %v508_v23 = vpack.c.bf16 (!%p140_p9), %v259_v22, %v258_v21  ;;  %v261_v25 = vld [vmem:[%s815_s2 + $0x58] sm:$0xff] (!%p140_p9)  ;;  %v262_v27 = vld [vmem:[%s815_s2 + $0x60] sm:$0xff] (!%p140_p9)  ;;  %v263_v28 = vld [vmem:[%s815_s2 + $0x68] sm:$0xff] (!%p140_p9)  ;;  %s351_s10 = sshll.u32 (!%p140_p9), %s161_s9, 4  ;;  %s772_s10 = int_to_ptr.vmem [resolvable:$true] %s351_s10 }
  0x13   : > { %v511_v26 = vpack.c.bf16 (!%p140_p9), %v261_v25, %v260_v24  ;;  %v514_v29 = vpack.c.bf16 (!%p140_p9), %v263_v28, %v262_v27  ;;  %v264_v30 = vld [vmem:[%s815_s2 + $0x70] sm:$0xff] (!%p140_p9)  ;;  %v265_v31 = vld [vmem:[%s815_s2 + $0x78] sm:$0xff] (!%p140_p9)  ;;  %s563_s24 = scalar_lea.vmem (!%p140_p9), %s772_s10, 128 }
  0x14   : > { %494 = vmatpush3.bf16.msra.mxu0 (!%p140_p9), %v493_v12  ;;  %v517_v32 = vpack.c.bf16 (!%p140_p9), %v265_v31, %v264_v30  ;;  %p564_p11 = scmp.ne.s32.totalorder (!%p140_p9), %s772_s10, %s563_s24 }
  0x15   : > { %s163_s19 = scalar_select %p162_p10, %s672_s16, 1  ;;  %500 = vmatpush3.bf16.msra.mxu1 %v499_v13 }
  0x16   : > { %501 = vmatprep.subr.bf16.mxu1 %v627_v3  ;;  %p565_p12 = pnand %p564_p11, %p689_p5  ;;  %s630_s16 = smov [#allocation2]  }
  0x17   : > { %s415_s20 = sshll.u32 %s163_s19, 3  ;;  %s770_s19 = scalar_lea.hbm %s816_s3, %s418_s8 }
  0x18   : > { %s165_s30 = scalar_lea.vmem %s813_s0, %s415_s20  ;;  %s338_s20 = scalar_lea.sflag [#allocation3], %s159_s6 }
  0x19   : > { %v166_v16 = vld [vmem:[%s165_s30] sm:$0xff]  ;;  %503 = vmatpush3.bf16.msra.mxu1 %v502_v17  ;;  %p566_p13 = pneg %p565_p12  ;;  %s567_s25 = sshll.u32 %s630_s16, 4  ;;  %s568_s25 = int_to_ptr.vmem [resolvable:$false] %s567_s25 }
  0x1a   : > { %452 = vmatmul.mubr.msk.f32.vlgmr.msra.gmra.mrb[0].mxu0 %vm171_vm1, %v166_v16  ;;  %504 = vmatprep.subr.bf16.mxu1 %v627_v3  ;;  %s569_s26 = scalar_lea.vmem %s568_s25, 256  ;;  %p570_p0 = scmp.lt.s32.totalorder %s772_s10, %s568_s25 }
  0x1b   : > { %p571_p1 = scmp.lt.s32.totalorder %s569_s26, %s563_s24 }
  0x1d   : > { %506 = vmatpush3.bf16.msra.mxu1 %v505_v20  ;;  %p572_p2 = por %p571_p1, %p570_p0 }
  0x1e   : > { %507 = vmatprep.subr.bf16.mxu1 %v627_v3 }
  0x1f   : > { %p573_p3 = pnand %p572_p2, %p566_p13 }
  0x21   : > { %509 = vmatpush3.bf16.msra.mxu1 %v508_v23 }
  0x22   : > { %510 = vmatprep.subr.bf16.mxu1 %v627_v3 }
  0x25   : > { %512 = vmatpush3.bf16.msra.mxu1 %v511_v26 }
  0x26   : > { %513 = vmatprep.subr.bf16.mxu1 %v627_v3 }
  0x29   : > { %515 = vmatpush3.bf16.msra.mxu1 %v514_v29 }
  0x2a   : > { %516 = vmatprep.subr.bf16.mxu1 %v627_v3 }
  0x2d   : > { %518 = vmatpush3.bf16.msra.mxu1 %v517_v32 }
  0xed   : > { %v241_v33 = vpop.f32.mrb[0].mxu0 }
  0xee   : > { %v246_v34 = vmul.f32 0.70710677, %v241_v33  ;;  %v453_v35 = vpop.f32.mrb[1].mxu0  ;;  %v245_v37 = vmul.f32 0.5, %v241_v33 }
  0xf0   : > { %561 = verf.f32 %v246_v34 }
  0xfa   : > { %v562_v36 = vpop.eup %561 }
  0xfb   : > { %v248_v38 = vadd.f32 1.0, %v562_v36 }
  0xfd   : > { %v249_v39 = vmul.f32 %v248_v38, %v245_v37 }
  0xff   : > { %487 = vmatmul.mubr.f32.vlgmr.msra.gmra.mrb[0].mxu1 %v249_v39 }
 0x1d2   : > { %v332_v40 = vpop.f32.mrb[0].mxu1 }
 0x1d3   : > { %336 = vst.msk [vmem:[%s161_s9] sm:$0xff] %vm171_vm1, %v332_v40  ;;  %v488_v41 = vpop.f32.mrb[1].mxu1 }
 0x1d4   : > { %576 = shalt.err (!%p573_p3)
}
 0x1d5   : > { %s577_s27 = scalar_lea.hbm %s770_s19, 128  ;;  %s581_s30 = scalar_lea.hbm %s816_s3, 256 }
 0x1d6   : > { %p578_p4 = scmp.ne.s32.totalorder %s770_s19, %s577_s27  ;;  %p582_p9 = scmp.lt.u32.totalorder %s770_s19, %s816_s3 }
 0x1d7   : > { %p583_p10 = scmp.lt.u32.totalorder %s581_s30, %s577_s27  ;;  %p585_p12 = scmp.lt.u32.totalorder %s577_s27, %s770_s19 }
 0x1d8   : > { %p579_p7 = pnand %p578_p4, %p689_p5 }
 0x1d9   : > { %p584_p11 = por %p583_p10, %p582_p9 }
 0x1da   : > { %p580_p8 = pneg %p579_p7 }
 0x1db   : > { %p586_p13 = por %p585_p12, %p584_p11 }
 0x1dd   : > { %p587_p0 = pnand %p586_p13, %p580_p8 }
 0x1df   : > { %590 = shalt.err (!%p587_p0)
}
 0x1e0   : > { %519 = dma.vmem_to_hbm [thread:$0]  (%p689_p5), %s772_s10, 128, %s770_s19, %s338_s20  }
 0x1e1 PF: > { %p525_p1 = scmp.ge.s32.totalorder %s625_s15, 2  ;;  %s363_s6 = sand.u32 1, %s613_s12  }
 0x1e2   : > { %s364_s7 = scalar_lea.sflag [#allocation3], %s363_s6 }
 0x1e3   : > { %p522_p2 = pnand %p525_p1, %p693_p6 }
 0x1e5   : > { %608 = dma.done.wait (!%p522_p2), %s364_s7, 128  }
 0x1e6   : > { %610 = vsyncadd (!%p522_p2), %s364_s7, 4294967168  ;;  %p13_p3 = scmp.ge.s32.totalorder %s676_s18, 4   ;;  %s819_s12 = smov %s617_s13 }
 0x1e7   : > { %s820_s13 = smov %s621_s14  ;;  %s821_s14 = smov %s687_s21 }
 0x1e8   : > { %s822_s15 = smov %s676_s18  ;;  %15 = sbr.rel (!%p13_p3) target bundleno = 3 (0x3), region = 67 }
 0x1ef   :  { %369 = vsyncpa [#allocation3], 1 }
 0x1f0   :  { %371 = vsyncpa [#allocation3 + $0x1], 1 }

</bundles_post_ra>
